<compile_context>
chip_gen: v5e
topology: v5e:2x2
jax: 0.10.0
libtpu: 0.0.40
codegen_flags: <defaults>
</compile_context>

<pallas_src>
import functools
import math

import jax
import jax.numpy as jnp
from jax.experimental import pallas as pl
from jax.experimental.pallas import tpu as pltpu

_LANE = 128


def _iq_sigmoid_math(x_f32, *, scale_x, l_scale, q_lo, q_hi):
    """Shared fixed-point-sigmoid math: f32 in -> f32 values in [0, 127/128]."""
    # --- QValue quantization of the input (Quant().quant, mode=QValue) ---
    # TODO(synk): jnp.round is round-half-to-even; if linger's Quant uses
    # floor(x*scale + 0.5) for the input quantization, half-way cases may
    # differ by 1 LSB.
    q_input = jnp.clip(jnp.round(x_f32 * scale_x), q_lo, q_hi)

    # --- shift the fixed-point value to Q11, then to float ---
    if l_scale > 0:
        # q * 2**l_scale (exact int) then /2**11 folded into one exact scale.
        x_f = q_input * float(2.0 ** (l_scale - 11))
    else:
        # Hardware down-shift rounds to nearest before the sigmoid.
        x_q11 = jnp.floor(q_input * float(2.0 ** l_scale) + 0.5)
        x_f = x_q11 * (1.0 / 2048.0)

    # --- fixed-point sigmoid (luna_iqsigmoid approximation), Q7 output ---
    y_int = jnp.clip(jnp.round(jax.nn.sigmoid(x_f) * 128.0), 0.0, 127.0)

    # --- dequantize with scale_z_iq = 2**7 ---
    return y_int * (1.0 / 128.0)


def _iq_sigmoid_kernel(x_ref, o_ref, *, scale_x, l_scale, q_lo, q_hi):
    # Compute in f32 regardless of I/O dtype (v5e has no bf16 VPU/EUP).
    x = x_ref[...].astype(jnp.float32)
    y = _iq_sigmoid_math(x, scale_x=scale_x, l_scale=l_scale, q_lo=q_lo, q_hi=q_hi)
    o_ref[...] = y.astype(o_ref.dtype)


def _choose_block_rows(rows, itemsize):
    # ~2 MiB blocks in the I/O dtype: big enough to amortize the ~0.35 us
    # per-grid-step overhead (near-roofline even at v7x's 3.2 TB/s), small
    # enough that double-buffered in+out (~4 blocks, 8 MiB for f32) clears
    # v5e's 16 MiB scoped-VMEM default with headroom.
    cap = max(8, ((2 * 1024 * 1024) // (_LANE * itemsize)) // 8 * 8)
    # Keep >= ~4 grid steps whenever the tensor spans multiple blocks so the
    # pipeline double-buffers and v7x's two TensorCores both get work.
    target = ((pl.cdiv(rows, 4) + 7) // 8) * 8
    block = min(cap, max(8, target))
    if block >= rows:
        block = rows  # single-step grid: full-extent block (no (8,128) rule)
    return block


def _run_iq_sigmoid_2d(x2d, *, scale_x, l_scale, q_lo, q_hi):
    rows = x2d.shape[0]
    block_rows = _choose_block_rows(rows, x2d.dtype.itemsize)
    grid = (pl.cdiv(rows, block_rows),)
    kernel = functools.partial(
        _iq_sigmoid_kernel, scale_x=scale_x, l_scale=l_scale, q_lo=q_lo, q_hi=q_hi
    )
    return pl.pallas_call(
        kernel,
        out_shape=jax.ShapeDtypeStruct(x2d.shape, x2d.dtype),
        grid=grid,
        in_specs=[pl.BlockSpec((block_rows, _LANE), lambda i: (i, 0))],
        out_specs=pl.BlockSpec((block_rows, _LANE), lambda i: (i, 0)),
        compiler_params=pltpu.CompilerParams(
            dimension_semantics=("parallel",),  # shards steps across v7x's 2 TCs
        ),
    )(x2d)


def iq_sigmoid_layer_forward(x, local_scale_o, scale_x, *, data_bits=16, training=True):
    """Pallas implementation of iqSigmoidLayer.forward (luna_quant path).

    Returns (y_float, scale_o, running_o) where y_float is the dequantized
    output (IQTensor data), and scale_o / running_o are the updated buffers.
    """
    # QValue mode: scale_x must be a power of two.
    scale_x = float(scale_x)
    l_scale = 11 - int(math.log2(scale_x))
    q_hi = float(2 ** (data_bits - 1) - 1)
    q_lo = -float(2 ** (data_bits - 1))
    params = dict(scale_x=scale_x, l_scale=l_scale, q_lo=q_lo, q_hi=q_hi)

    orig_shape = x.shape
    total = x.size

    if total == 0:
        y = x
    elif total % _LANE == 0:
        # Free (contiguous) reshape to a lane-dense slab; no pad/slice passes.
        y = _run_iq_sigmoid_2d(x.reshape(-1, _LANE), **params).reshape(orig_shape)
    else:
        # Ragged element count: kernel on the 128-aligned prefix, plain jnp on
        # the (<=127-element) tail.  Avoids full-tensor pad + slice round trips.
        aligned = (total // _LANE) * _LANE
        xflat = x.reshape(-1)
        tail = _iq_sigmoid_math(xflat[aligned:].astype(jnp.float32), **params).astype(x.dtype)
        if aligned:
            head = _run_iq_sigmoid_2d(
                xflat[:aligned].reshape(-1, _LANE), **params
            ).reshape(-1)
            y = jnp.concatenate([head, tail]).reshape(orig_shape)
        else:
            y = tail.reshape(orig_shape)

    # Buffer updates: the luna path forces these regardless of training mode
    # (running_o is momentum-updated first in training, then overwritten to 1.0).
    scale_o = jnp.float32(128.0)     # scale_z_iq = 2**7
    running_o = jnp.float32(1.0)
    return y, scale_o, running_o


if __name__ == "__main__":
    key = jax.random.PRNGKey(0)
    # Small NCHW input consistent with a conv-style activation tensor.
    x = jax.random.normal(key, (2, 4, 16, 16), dtype=jnp.float32) * 3.0

    # Synthetic quantization metadata (input.scale_data and local_scale_o).
    scale_x = 256.0          # power of two -> QValue-compatible input scale
    local_scale_o = 127.0    # unused on the luna path beyond buffer bookkeeping

    y, scale_o, running_o = iq_sigmoid_layer_forward(
        x, local_scale_o, scale_x, data_bits=16, training=True
    )
    jax.block_until_ready(y)

    # Sanity check against the float reference (quantized sigmoid is within
    # 1/128 of sigmoid plus input-quantization error).
    ref = jnp.round(jnp.clip(jax.nn.sigmoid(x), 0.0, 1.0) * 128.0)
    ref = jnp.clip(ref, 0.0, 127.0) / 128.0
    assert jnp.max(jnp.abs(y - ref)) <= (1.0 / 128.0 + 1e-3), "mismatch vs reference"
    assert y.shape == x.shape and y.dtype == x.dtype
    assert float(scale_o) == 128.0 and float(running_o) == 1.0

    # Extra check: ragged element count exercises the prefix + jnp-tail path.
    x2 = jax.random.normal(jax.random.PRNGKey(1), (3, 5, 7), dtype=jnp.float32) * 2.0
    y2, _, _ = iq_sigmoid_layer_forward(x2, local_scale_o, scale_x, data_bits=16)
    jax.block_until_ready(y2)
    ref2 = jnp.clip(jnp.round(jax.nn.sigmoid(x2) * 128.0), 0.0, 127.0) / 128.0
    assert jnp.max(jnp.abs(y2 - ref2)) <= (1.0 / 128.0 + 1e-3), "ragged-path mismatch"

    print("KERNEL_OK")
</pallas_src>

<mosaic_0001>
module attributes {stable_mosaic.version = 11 : i64} {
  func.func @_iq_sigmoid_kernel(%arg0: i32, %arg1: memref<8x128xf32, #tpu.memory_space<vmem>>, %arg2: memref<8x128xf32, #tpu.memory_space<vmem>>) attributes {dimension_semantics = [#tpu.dimension_semantics<parallel>], iteration_bounds = array<i64: 2>, scalar_prefetch = 0 : i64, scratch_operands = 0 : i64, tpu.core_type = #tpu.core_type<tc>, window_params = [{transform_indices = @transform_0, window_bounds = array<i64: 8, 128>}, {transform_indices = @transform_1, window_bounds = array<i64: 8, 128>}]} {
    %c0 = arith.constant 0 : index
    %c0_0 = arith.constant 0 : index
    %0 = vector.load %arg1[%c0, %c0_0] : memref<8x128xf32, #tpu.memory_space<vmem>>, vector<8x128xf32>
    %cst = arith.constant 2.560000e+02 : f32
    %1 = vector.broadcast %cst : f32 to vector<8x128xf32>
    %2 = arith.mulf %0, %1 : vector<8x128xf32>
    %3 = math.roundeven %2 : vector<8x128xf32>
    %cst_1 = arith.constant -3.276800e+04 : f32
    %cst_2 = arith.constant 3.276700e+04 : f32
    %4 = vector.broadcast %cst_1 : f32 to vector<8x128xf32>
    %5 = arith.maximumf %4, %3 : vector<8x128xf32>
    %6 = vector.broadcast %cst_2 : f32 to vector<8x128xf32>
    %7 = arith.minimumf %6, %5 : vector<8x128xf32>
    %cst_3 = arith.constant 3.906250e-03 : f32
    %8 = vector.broadcast %cst_3 : f32 to vector<8x128xf32>
    %9 = arith.mulf %7, %8 : vector<8x128xf32>
    %10 = arith.negf %9 : vector<8x128xf32>
    %11 = math.exp %10 : vector<8x128xf32>
    %cst_4 = arith.constant 1.000000e+00 : f32
    %12 = vector.broadcast %cst_4 : f32 to vector<8x128xf32>
    %13 = arith.addf %12, %11 : vector<8x128xf32>
    %14 = arith.divf %12, %13 : vector<8x128xf32>
    %cst_5 = arith.constant 1.280000e+02 : f32
    %15 = vector.broadcast %cst_5 : f32 to vector<8x128xf32>
    %16 = arith.mulf %14, %15 : vector<8x128xf32>
    %17 = math.roundeven %16 : vector<8x128xf32>
    %cst_6 = arith.constant 0.000000e+00 : f32
    %cst_7 = arith.constant 1.270000e+02 : f32
    %18 = vector.broadcast %cst_6 : f32 to vector<8x128xf32>
    %19 = arith.maximumf %18, %17 : vector<8x128xf32>
    %20 = vector.broadcast %cst_7 : f32 to vector<8x128xf32>
    %21 = arith.minimumf %20, %19 : vector<8x128xf32>
    %cst_8 = arith.constant 7.812500e-03 : f32
    %22 = vector.broadcast %cst_8 : f32 to vector<8x128xf32>
    %23 = arith.mulf %21, %22 : vector<8x128xf32>
    %c0_9 = arith.constant 0 : index
    %c0_10 = arith.constant 0 : index
    %24 = vector.load %arg2[%c0_9, %c0_10] : memref<8x128xf32, #tpu.memory_space<vmem>>, vector<8x128xf32>
    tpu.vector_store %arg2[%c0_9, %c0_10], %23 {strides = array<i32>} : memref<8x128xf32, #tpu.memory_space<vmem>>, vector<8x128xf32>,
    return
  }
  func.func @transform_0(%arg0: i32) -> (i32, i32) {
    %c0_i32 = arith.constant 0 : i32
    %c0_i32_0 = arith.constant 0 : i32
    return %arg0, %c0_i32 : i32, i32
  }
  func.func @transform_1(%arg0: i32) -> (i32, i32) {
    %c0_i32 = arith.constant 0 : i32
    %c0_i32_0 = arith.constant 0 : i32
    return %arg0, %c0_i32 : i32, i32
  }
}

</mosaic_0001>

<bundles_post_ra>
// kernel: tpu_custom_call.1
= control target key start
LH: loop header
LB: loop body
LE: loop exit
PB: predicated region body
PF: predicated region fallthrough
CT: control target
= control target key end

     0   :  { %6 = vsyncpa [#allocation3], 0  ;;  %s569_s0 = inlined_call_operand.hbm [shape: f32[16,128], index: 0, kind: input, shape index: {}]   ;;  %s570_s1 = inlined_call_operand.hbm [shape: f32[16,128], index: 1, kind: output, shape index: {}]  }
   0x1   :  { %8 = vsyncpa [#allocation3 + $0x1], 0 }
   0x2   :  { %9 = vsyncpa [#allocation4], 0 }
   0x3   :  { %11 = vsyncpa [#allocation4 + $0x1], 0  ;;  %s438_s6 = smov 0   ;;  %s440_s7 = smov 0  }
   0x4   :  { %s442_s8 = smov 0   ;;  %s444_s9 = smov 0  }
   0x5 LB: > { %s459_s10 = sadd.s32 4294967295, %s426_s9   ;;  %s251_s11 = sadd.s32 4294967294, %s426_s9   ;;  %s426_s9 = sphi %s444_s9, %s580_s9   ;;  %s422_s8 = sphi %s442_s8, %s579_s8   ;;  %s418_s7 = sphi %s440_s7, %s578_s7   ;;  %s414_s6 = sphi %s438_s6, %s577_s6  }
   0x6   : > { %s463_s12 = sadd.s32 1, %s426_s9   ;;  %s24_s13 = sadd.s32 1, %s422_s8 }
   0x7   : > { %s21_s14 = ssub.s32 %s426_s9, %s463_s12  ;;  %p31_p0 = scmp.ne.s32.totalorder %s422_s8, %s418_s7 }
   0x8   : > { %p22_p1 = scmp.eq.s32.totalorder %s21_s14, 0  ;;  %p32_p2 = scmp.eq.s32.totalorder %s426_s9, 0 }
   0x9   : > { %p37_p3 = scmp.ne.s32.totalorder %s418_s7, %s414_s6  ;;  %p38_p4 = scmp.eq.s32.totalorder %s459_s10, 0 }
   0xa   : > { %s475_s15 = scalar_select %p22_p1, %s422_s8, %s24_s13  }
   0xb   : > { %p477_p5 = por %p32_p2, %p31_p0  ;;  %p481_p6 = por %p38_p4, %p37_p3 }
   0xc   : > { %p61_p7 = scmp.eq.s32.totalorder %s459_s10, 1  ;;  %p67_p8 = scmp.eq.s32.totalorder %s251_s11, 1 }
   0xd   : > { %p292_p10 = scmp.lt.s32.totalorder %s426_s9, 2  ;;  %s87_s20 = sand.u32 1, %s422_s8  }
   0xe   : > { %p488_p11 = por %p61_p7, %p31_p0  ;;  %p492_p12 = por %p67_p8, %p37_p3 }
   0xf   : > { %s255_s21 = sshll.u32 %s426_s9, 3  ;;  %s254_s22 = sshll.u32 %s87_s20, 3 }
  0x10   : > { %s95_s25 = scalar_lea.hbm %s569_s0, %s255_s21  ;;  %s91_s27 = scalar_lea.vmem [#allocation2], %s254_s22 }
  0x11   : > { %s97_s26 = sshll.u32 %s95_s25, 4  ;;  %s99_s28 = sshll.u32 %s91_s27, 4  ;;  %s98_s26 = int_to_ptr.hbm [resolvable:$true] %s97_s26  ;;  %s100_s28 = int_to_ptr.vmem [resolvable:$true] %s99_s28 }
  0x12   : > { %p503_p13 = pnand %p292_p10, %p477_p5  ;;  %p256_p0 = scmp.ge.s32.totalorder %s426_s9, 1 }
  0x13   : > { %p104_p1 = scmp.lt.s32.totalorder %s426_s9, 3  ;;  %s88_s30 = scalar_lea.sflag [#allocation3], %s87_s20 }
  0x14   : > { %s330_s2 = sshra.s32 %s98_s26, 4  ;;  %p334_p3 = pneg %p503_p13  ;;  %s331_s2 = int_to_ptr.hbm [resolvable:$true] %s330_s2 }
  0x15   : > { %s332_s3 = scalar_lea.hbm %s331_s2, 8  ;;  %s337_s11 = scalar_lea.hbm %s569_s0, 16 }
  0x16   : > { %p333_p2 = scmp.ne.s32.totalorder %s331_s2, %s332_s3  ;;  %p338_p5 = scmp.lt.s32.totalorder %s331_s2, %s569_s0 }
  0x17   : > { %p339_p8 = scmp.lt.s32.totalorder %s337_s11, %s332_s3 }
  0x18   : > { %p335_p4 = pnand %p334_p3, %p333_p2 }
  0x19   : > { %p340_p10 = por %p339_p8, %p338_p5 }
  0x1a   : > { %p336_p7 = pneg %p335_p4 }
  0x1c   : > { %p341_p9 = pnand %p340_p10, %p336_p7 }
  0x1e   : > { %344 = shalt.err (!%p341_p9)
}
  0x1f   : > { %287 = dma.hbm_to_vmem [thread:$0]  (!%p503_p13), %s98_s26, 128, %s100_s28, %s88_s30  }
  0x20   : > { %p105_p2 = pnand %p256_p0, %p104_p1 }
  0x21   : > { %s524_s16 = sand.u32 (!%p105_p2), 1, %s418_s7  }
  0x22   : > { %108 = sbr.rel (%p105_p2) target bundleno = 106 (0x6a), region = 24  ;;  %s257_s20 = sshll.u32 (!%p105_p2), %s524_s16, 3 }
  0x23   : > { %s111_s21 = scalar_lea.sflag (!%p105_p2), [#allocation3], %s524_s16  ;;  %s114_s22 = scalar_lea.vmem (!%p105_p2), [#allocation2], %s257_s20 }
  0x27   : > { %405 = dma.done.wait (%p481_p6), %s111_s21, 128  }
  0x28   : > { %407 = vsyncadd (%p481_p6), %s111_s21, 4294967168  ;;  %v134_v0 = vld [vmem:[%s114_s22] sm:$0xff]  ;;  %s261_s17 = sshll.u32 %s459_s10, 3  ;;  %s133_s26 = scalar_lea.vmem [#allocation5], %s257_s20 }
  0x29   : > { %v135_v1 = vmul.f32 256.0, %v134_v0  ;;  %s176_s25 = scalar_lea.hbm %s570_s1, %s261_s17  ;;  %s178_s27 = sshll.u32 %s133_s26, 4  ;;  %s179_s27 = int_to_ptr.vmem [resolvable:$true] %s178_s27 }
  0x2a   : > { %s180_s28 = sshll.u32 %s176_s25, 4  ;;  %s166_s29 = scalar_lea.sflag [#allocation4], %s524_s16  ;;  %s181_s28 = int_to_ptr.hbm [resolvable:$true] %s180_s28 }
  0x2b   : > { %v266_v2 = vcvt.f32.s32 %v135_v1  ;;  %v264_v3 = vand.u32 2147483647, %v135_v1  ;;  %v269_v5 = vand.u32 2147483648, %v135_v1  ;;  %s374_s10 = sshra.s32 %s181_s28, 4  ;;  %s380_s4 = scalar_lea.hbm %s570_s1, 16  ;;  %s375_s10 = int_to_ptr.hbm [resolvable:$true] %s374_s10 }
  0x2c   : > { %s376_s30 = scalar_lea.hbm %s375_s10, 8  ;;  %p381_p0 = scmp.lt.s32.totalorder %s375_s10, %s570_s1 }
  0x2d   : > { %v267_v4 = vcvt.s32.f32 %v266_v2  ;;  %vm265_vm0 = vcmp.lt.f32.partialorder %v264_v3, 8388608.0  ;;  %p377_p6 = scmp.ne.s32.totalorder %s375_s10, %s376_s30  ;;  %p382_p1 = scmp.lt.s32.totalorder %s380_s4, %s376_s30 }
  0x2f   : > { %v268_v6 = vand.u32 2147483647, %v267_v4  ;;  %p378_p9 = pnand %p377_p6, %p488_p11  ;;  %p383_p3 = por %p382_p1, %p381_p0 }
  0x31   : > { %v270_v7 = vor.u32 %v269_v5, %v268_v6  ;;  %p379_p13 = pneg %p378_p9 }
  0x33   : > { %v271_v8 = vsel %vm265_vm0, %v270_v7, %v135_v1  ;;  %p384_p4 = pnand %p383_p3, %p379_p13 }
  0x34   : > { %v137_v9 = vmax.f32 %v271_v8, -32768.0 }
  0x36   : > { %v138_v10 = vmin.f32 %v137_v9, 32767.0 }
  0x38   : > { %v259_v11 = vmul.f32 -0.00390625, %v138_v10 }
  0x3a   : > { %v141_v12 = vmul.f32 1.442695, %v259_v11 }
  0x3c   : > { %326 = vpow2.f32 %v141_v12 }
  0x42   : > { %v327_v13 = vpop.eup %326 }
  0x43   : > { %v143_v14 = vadd.f32 1.0, %v327_v13 }
  0x45   : > { %328 = vrcp.f32 %v143_v14  ;;  %v155_v17 = vand.u32 2147483648, %v143_v14  ;;  %vm149_vm1 = vweird.f32 %v143_v14  ;;  %v153_v19 = vand.u32 2147483647, %v143_v14 }
  0x47   : > { %v156_v21 = vor.u32 1.1754944e-38, %v155_v17  ;;  %vm154_vm4 = vcmp.eq.f32.partialorder %v153_v19, 8.507059e+37 }
  0x4b   : > { %v329_v15 = vpop.eup %328 }
  0x4c   : > { %v145_v16 = vmul.f32 %v329_v15, %v143_v14  ;;  %vm150_vm2 = vweird.f32 %v329_v15 }
  0x4d   : > { %vm151_vm3 = vmor %vm149_vm1, %vm150_vm2 }
  0x4e   : > { %v146_v18 = vsub.f32 1.0, %v145_v16 }
  0x50   : > { %v147_v20 = vmul.f32 %v329_v15, %v146_v18 }
  0x52   : > { %v148_v22 = vadd.f32 %v329_v15, %v147_v20 }
  0x54   : > { %v152_v23 = vsel %vm151_vm3, %v329_v15, %v148_v22 }
  0x55   : > { %v157_v24 = vsel %vm154_vm4, %v156_v21, %v152_v23 }
  0x56   : > { %v159_v25 = vmul.f32 128.0, %v157_v24 }
  0x58   : > { %v274_v26 = vcvt.f32.s32 %v159_v25  ;;  %v272_v27 = vand.u32 2147483647, %v159_v25  ;;  %v277_v29 = vand.u32 2147483648, %v159_v25 }
  0x5a   : > { %v275_v28 = vcvt.s32.f32 %v274_v26  ;;  %vm273_vm5 = vcmp.lt.f32.partialorder %v272_v27, 8388608.0 }
  0x5c   : > { %v276_v30 = vand.u32 2147483647, %v275_v28 }
  0x5e   : > { %v278_v31 = vor.u32 %v277_v29, %v276_v30 }
  0x60   : > { %v279_v32 = vsel %vm273_vm5, %v278_v31, %v159_v25 }
  0x61   : > { %v161_v33 = vmax.f32 %v279_v32, 0.0 }
  0x63   : > { %v162_v34 = vmin.f32 %v161_v33, 127.0 }
  0x65   : > { %v163_v35 = vmul.f32 0.0078125, %v162_v34 }
  0x67   : > { %164 = vst [vmem:[%s133_s26] sm:$0xff] %v163_v35 }
  0x68   : > { %387 = shalt.err (!%p384_p4)
}
  0x69   : > { %282 = dma.vmem_to_hbm [thread:$0]  (%p488_p11), %s179_s27, 128, %s181_s28, %s166_s29  }
  0x6a PF: > { %s192_s13 = sand.u32 1, %s414_s6   ;;  %p576_p7 = scmp.ge.s32.totalorder %s426_s9, 2 }
  0x6b   : > { %s193_s14 = scalar_lea.sflag [#allocation4], %s192_s13 }
  0x6c   : > { %p289_p5 = pnand %p576_p7, %p492_p12 }
  0x6e   : > { %p290_p8 = pneg %p289_p5 }
  0x70   : > { %409 = dma.done.wait (%p290_p8), %s193_s14, 128  }
  0x71   : > { %411 = vsyncadd (%p290_p8), %s193_s14, 4294967168  ;;  %p14_p10 = scmp.ge.s32.totalorder %s463_s12, 4   ;;  %s577_s6 = smov %s418_s7 }
  0x72   : > { %s578_s7 = smov %s422_s8  ;;  %s579_s8 = smov %s475_s15 }
  0x73   : > { %s580_s9 = smov %s463_s12  ;;  %16 = sbr.rel (!%p14_p10) target bundleno = 5 (0x5), region = 69 }
  0x78   :  { %199 = vsyncpa [#allocation3], 1 }
  0x79   :  { %201 = vsyncpa [#allocation3 + $0x1], 1 }
  0x7a   :  { %202 = vsyncpa [#allocation4], 1 }
  0x7b   :  { %204 = vsyncpa [#allocation4 + $0x1], 1 }

</bundles_post_ra>
